<compile_context>
chip_gen: v6e
topology: v6e:2x2x1
jax: 0.10.0
libtpu: 0.0.40
codegen_flags: <defaults>
</compile_context>

<pallas_src>
import functools

import jax
import jax.numpy as jnp
from jax import lax
from jax.experimental import pallas as pl
from jax.experimental.pallas import tpu as pltpu

_BN_EPS = 1e-5


# ----------------------------------------------------------------------------
# Fused matmul kernel: out = act(x @ w_folded + bias [+ residual])
#   x is cast to bf16 inside the kernel (native MXU path), accumulate in f32,
#   BN scale pre-folded into w, epilogue stays in f32.
# ----------------------------------------------------------------------------
def _make_mm_kernel(relu: bool, has_residual: bool):
    if has_residual:
        def kernel(x_ref, w_ref, b_ref, r_ref, o_ref):
            acc = jnp.dot(x_ref[...].astype(jnp.bfloat16), w_ref[...],
                          preferred_element_type=jnp.float32)
            out = acc + b_ref[...]
            out = out + r_ref[...].astype(jnp.float32)
            if relu:
                out = jnp.maximum(out, 0.0)
            o_ref[...] = out.astype(o_ref.dtype)
    else:
        def kernel(x_ref, w_ref, b_ref, o_ref):
            acc = jnp.dot(x_ref[...].astype(jnp.bfloat16), w_ref[...],
                          preferred_element_type=jnp.float32)
            out = acc + b_ref[...]
            if relu:
                out = jnp.maximum(out, 0.0)
            o_ref[...] = out.astype(o_ref.dtype)
    return kernel


def matmul_bn_act(x, w_folded, bias, residual=None, relu=False,
                  out_dtype=None, tm_max=512):
    """x:(M,K) @ w_folded:(K,N) + bias (+ residual), optional ReLU."""
    M, K = x.shape
    Kw, Nc = w_folded.shape
    assert K == Kw
    out_dtype = out_dtype if out_dtype is not None else x.dtype

    # Big M tiles for memory-bound 1x1 convs; a single full-extent tile when M
    # is small (avoids padding entirely). For larger M, pad up to tm=512.
    if M <= tm_max:
        tm, Mp = M, M
    else:
        tm = tm_max
        Mp = pl.cdiv(M, tm) * tm
    if Mp != M:
        x = jnp.pad(x, ((0, Mp - M), (0, 0)))
        if residual is not None:
            residual = jnp.pad(residual, ((0, Mp - M), (0, 0)))

    wb = w_folded.astype(jnp.bfloat16)                 # bf16 weights on MXU
    b2 = bias.reshape(1, Nc).astype(jnp.float32)

    in_specs = [
        pl.BlockSpec((tm, K), lambda i: (i, 0)),       # activation tile
        pl.BlockSpec((K, Nc), lambda i: (0, 0)),       # resident folded weight
        pl.BlockSpec((1, Nc), lambda i: (0, 0)),       # folded BN bias
    ]
    args = [x, wb, b2]
    if residual is not None:
        in_specs.append(pl.BlockSpec((tm, Nc), lambda i: (i, 0)))
        args.append(residual.astype(jnp.float32))

    out_itemsize = jnp.dtype(out_dtype).itemsize
    bytes_acc = (Mp * K * x.dtype.itemsize + K * Nc * 2 + Nc * 4
                 + Mp * Nc * out_itemsize
                 + (Mp * Nc * 4 if residual is not None else 0))

    out = pl.pallas_call(
        _make_mm_kernel(relu, residual is not None),
        out_shape=jax.ShapeDtypeStruct((Mp, Nc), out_dtype),
        grid=(Mp // tm,),
        in_specs=in_specs,
        out_specs=pl.BlockSpec((tm, Nc), lambda i: (i, 0)),
        compiler_params=pltpu.CompilerParams(
            dimension_semantics=("parallel",)),
        cost_estimate=pl.CostEstimate(flops=2 * Mp * K * Nc,
                                      transcendentals=0,
                                      bytes_accessed=int(bytes_acc)),
    )(*args)
    return out[:M] if Mp != M else out


# ----------------------------------------------------------------------------
# Fused 3x3 conv kernel (stride s, pad 1) + BN + ReLU, no HBM im2col.
# One grid step per image: the whole padded image stays resident in VMEM and
# an in-kernel fori_loop walks output rows; the 9 taps are unrolled and
# accumulated in f32 registers (x_tap @ w_tap on the MXU).
# ----------------------------------------------------------------------------
def _conv3x3_kernel(x_ref, w_ref, b_ref, o_ref, *, stride, Ho, Wk):
    # x_ref: (Hp, Wp, C) bf16 padded image   w_ref: (9, C, Cout) bf16
    # b_ref: (1, Cout) f32                   o_ref: (Ho, Wk, Cout)
    cout = o_ref.shape[-1]
    bias = b_ref[...]

    def row_body(ho, carry):
        x_win = x_ref[pl.ds(ho * stride, 3)]           # (3, Wp, C)
        acc = jnp.zeros((Wk, cout), jnp.float32)
        for kh in range(3):                            # unrolled 9 taps
            for kw in range(3):
                x_tap = x_win[kh, kw:kw + Wk, :]       # (Wk, C) shifted slice
                acc = acc + jnp.dot(x_tap, w_ref[kh * 3 + kw],
                                    preferred_element_type=jnp.float32)
        o_ref[ho] = jnp.maximum(acc + bias, 0.0).astype(o_ref.dtype)
        return carry

    lax.fori_loop(0, Ho, row_body, 0)


def conv3x3_bn_relu(x_nhwc, w_taps, bias, stride):
    """3x3 conv, pad 1, stride s, with folded BN + ReLU. Returns (out, Ho, Wo)."""
    N, H, W, C = x_nhwc.shape
    Cout = w_taps.shape[-1]
    Ho = (H - 1) // stride + 1
    Wo = (W - 1) // stride + 1
    Hp, Wp = H + 2, W + 2
    Wk = W   # kernel always computes unit column stride; subsample afterwards

    xp = jnp.pad(x_nhwc.astype(jnp.bfloat16), ((0, 0), (1, 1), (1, 1), (0, 0)))
    wt = w_taps.astype(jnp.bfloat16)
    b2 = bias.reshape(1, Cout).astype(jnp.float32)

    bytes_acc = (N * Hp * Wp * C * 2 + 9 * C * Cout * 2
                 + N * Ho * Wk * Cout * 2 + Cout * 4)
    out = pl.pallas_call(
        functools.partial(_conv3x3_kernel, stride=stride, Ho=Ho, Wk=Wk),
        out_shape=jax.ShapeDtypeStruct((N, Ho, Wk, Cout), jnp.bfloat16),
        grid=(N,),
        in_specs=[
            pl.BlockSpec((None, Hp, Wp, C), lambda n: (n, 0, 0, 0)),
            pl.BlockSpec((9, C, Cout), lambda n: (0, 0, 0)),
            pl.BlockSpec((1, Cout), lambda n: (0, 0)),
        ],
        out_specs=pl.BlockSpec((None, Ho, Wk, Cout), lambda n: (n, 0, 0, 0)),
        compiler_params=pltpu.CompilerParams(
            dimension_semantics=("parallel",)),
        cost_estimate=pl.CostEstimate(flops=2 * N * Ho * Wk * 9 * C * Cout,
                                      transcendentals=0,
                                      bytes_accessed=int(bytes_acc)),
    )(xp, wt, b2)
    if stride > 1:
        out = out[:, :, ::stride, :]                   # cheap column subsample
    return out, Ho, Wo


# ----------------------------------------------------------------------------
# Glue: BN folding and weight reshapes
# ----------------------------------------------------------------------------
def _fold_bn(conv_bias, gamma, beta, mean, var, eps=_BN_EPS):
    scale = gamma / jnp.sqrt(var + eps)
    bias = (conv_bias - mean) * scale + beta
    return scale, bias


def _w1x1(w):                      # (Cout,Cin,1,1) -> (Cin,Cout)
    return jnp.transpose(w[:, :, 0, 0], (1, 0))


def _w3x3_taps(w):                 # (Cout,Cin,3,3) -> (9,Cin,Cout), tap = kh*3+kw
    return jnp.transpose(w, (2, 3, 1, 0)).reshape(9, w.shape[1], w.shape[0])


# ----------------------------------------------------------------------------
# Bottleneck forward (Pallas)
# ----------------------------------------------------------------------------
def bottleneck_forward(x_nchw, p, stride, downsampling, dim):
    x = jnp.transpose(x_nchw, (0, 2, 3, 1))            # NCHW -> NHWC
    N, H, W, Cin = x.shape
    C = p["w1"].shape[0]
    Ce = p["w3"].shape[0]

    # conv1 (1x1) + BN + ReLU   (BN scale folded into weight)
    s1, b1 = _fold_bn(p["b1"], p["g1"], p["be1"], p["m1"], p["v1"])
    w1 = _w1x1(p["w1"]) * s1[None, :]
    h1 = matmul_bn_act(x.reshape(N * H * W, Cin), w1, b1,
                       relu=True, out_dtype=jnp.bfloat16)
    h1 = h1.reshape(N, H, W, C)

    # conv2 (3x3, stride s, pad 1) + BN + ReLU — fused 9-tap kernel, no im2col
    s2, b2 = _fold_bn(p["b2"], p["g2"], p["be2"], p["m2"], p["v2"])
    w2 = _w3x3_taps(p["w2"]) * s2[None, None, :]
    h2, Ho, Wo = conv3x3_bn_relu(h1, w2, b2, stride)

    # shortcut
    if downsampling:
        xs = x[:, ::stride, ::stride, :]               # 1x1 conv stride s
        sd, bd = _fold_bn(p["bd"], p["gd"], p["bed"], p["md"], p["vd"])
        wd = _w1x1(p["wd"]) * sd[None, :]
        shortcut = matmul_bn_act(xs.reshape(N * Ho * Wo, Cin), wd, bd,
                                 relu=False, out_dtype=jnp.float32)
    else:
        assert stride == 1 and Cin == Ce, (
            "identity shortcut requires stride=1 and in_channel == out_channel*dim")
        shortcut = x.reshape(N * H * W, Cin).astype(jnp.float32)

    # conv3 (1x1) + BN + residual add + ReLU, fused in one kernel
    s3, b3 = _fold_bn(p["b3"], p["g3"], p["be3"], p["m3"], p["v3"])
    w3 = _w1x1(p["w3"]) * s3[None, :]
    out = matmul_bn_act(h2.reshape(N * Ho * Wo, C), w3, b3,
                        residual=shortcut, relu=True, out_dtype=jnp.float32)

    out = out.reshape(N, Ho, Wo, Ce)
    return jnp.transpose(out, (0, 3, 1, 2))            # NHWC -> NCHW


# ----------------------------------------------------------------------------
# Pure-JAX reference (f32 lax conv) for correctness check
# ----------------------------------------------------------------------------
def ref_forward(x, p, stride, downsampling, dim, eps=_BN_EPS):
    def conv(x, w, b, s, pad):
        y = lax.conv_general_dilated(
            x, w, (s, s), [(pad, pad), (pad, pad)],
            dimension_numbers=("NCHW", "OIHW", "NCHW"))
        return y + b[None, :, None, None]

    def bn(y, g, be, m, v):
        return (y - m[None, :, None, None]) / jnp.sqrt(
            v[None, :, None, None] + eps) * g[None, :, None, None] + be[None, :, None, None]

    h = jax.nn.relu(bn(conv(x, p["w1"], p["b1"], 1, 0),
                       p["g1"], p["be1"], p["m1"], p["v1"]))
    h = jax.nn.relu(bn(conv(h, p["w2"], p["b2"], stride, 1),
                       p["g2"], p["be2"], p["m2"], p["v2"]))
    h = bn(conv(h, p["w3"], p["b3"], 1, 0),
           p["g3"], p["be3"], p["m3"], p["v3"])
    if downsampling:
        sc = bn(conv(x, p["wd"], p["bd"], stride, 0),
                p["gd"], p["bed"], p["md"], p["vd"])
    else:
        sc = x
    return jax.nn.relu(h + sc)


# ----------------------------------------------------------------------------
# Deterministic parameter init (shapes follow the torch module's __init__)
# ----------------------------------------------------------------------------
def init_params(key, in_channel, out_channel, dim, downsampling):
    C, Ce = out_channel, out_channel * dim
    keys = iter(jax.random.split(key, 32))

    def conv_w(shape):
        return 0.1 * jax.random.normal(next(keys), shape, jnp.float32)

    def bn(c):
        return dict(
            g=jax.random.uniform(next(keys), (c,), jnp.float32, 0.5, 1.5),
            be=0.1 * jax.random.normal(next(keys), (c,), jnp.float32),
            m=0.1 * jax.random.normal(next(keys), (c,), jnp.float32),
            v=jax.random.uniform(next(keys), (c,), jnp.float32, 0.5, 1.5),
        )

    p = {}
    p["w1"], p["b1"] = conv_w((C, in_channel, 1, 1)), conv_w((C,))
    b = bn(C); p["g1"], p["be1"], p["m1"], p["v1"] = b["g"], b["be"], b["m"], b["v"]
    p["w2"], p["b2"] = conv_w((C, C, 3, 3)), conv_w((C,))
    b = bn(C); p["g2"], p["be2"], p["m2"], p["v2"] = b["g"], b["be"], b["m"], b["v"]
    p["w3"], p["b3"] = conv_w((Ce, C, 1, 1)), conv_w((Ce,))
    b = bn(Ce); p["g3"], p["be3"], p["m3"], p["v3"] = b["g"], b["be"], b["m"], b["v"]
    if downsampling:
        p["wd"], p["bd"] = conv_w((Ce, in_channel, 1, 1)), conv_w((Ce,))
        b = bn(Ce); p["gd"], p["bed"], p["md"], p["vd"] = b["g"], b["be"], b["m"], b["v"]
    return p


if __name__ == "__main__":
    key = jax.random.PRNGKey(0)
    configs = [
        # (in_channel, out_channel, stride, downsampling, dim, N, H, W)
        (32, 8, 1, False, 4, 2, 8, 8),   # identity shortcut
        (16, 8, 1, True, 4, 2, 8, 8),    # projection shortcut, stride 1
        (16, 8, 2, True, 4, 2, 8, 8),    # projection shortcut, stride 2
    ]
    for cin, cout, stride, down, dim, N, H, W in configs:
        k_x, k_p, key = jax.random.split(key, 3)
        x = jax.random.normal(k_x, (N, cin, H, W), jnp.float32)
        params = init_params(k_p, cin, cout, dim, down)

        fwd = jax.jit(functools.partial(bottleneck_forward, stride=stride,
                                        downsampling=down, dim=dim))
        out = jax.block_until_ready(fwd(x, params))

        ref = ref_forward(x, params, stride, down, dim)
        Ho = (H - 1) // stride + 1
        assert out.shape == ref.shape == (N, cout * dim, Ho, Ho), (out.shape, ref.shape)
        max_err = float(jnp.max(jnp.abs(out - ref)))
        # bf16 MXU inputs (f32 accumulate / f32 epilogue) -> loosened tolerance.
        assert jnp.allclose(out, ref, atol=5e-2, rtol=5e-2), (
            cin, cout, stride, down, max_err)

    print("KERNEL_OK")
</pallas_src>

<mosaic_0001>
module attributes {stable_mosaic.version = 11 : i64} {
  func.func @kernel(%arg0: i32, %arg1: memref<128x32xf32, #tpu.memory_space<vmem>>, %arg2: memref<32x8xbf16, #tpu.memory_space<vmem>>, %arg3: memref<1x8xf32, #tpu.memory_space<vmem>>, %arg4: memref<128x8xbf16, #tpu.memory_space<vmem>>) attributes {dimension_semantics = [#tpu.dimension_semantics<parallel>], iteration_bounds = array<i64: 1>, scalar_prefetch = 0 : i64, scratch_operands = 0 : i64, tpu.core_type = #tpu.core_type<tc>, window_params = [{transform_indices = @transform_0, window_bounds = array<i64: 128, 32>}, {pipeline_mode = #tpu.pipeline_mode<synchronous>, transform_indices = @transform_1, window_bounds = array<i64: 32, 8>}, {pipeline_mode = #tpu.pipeline_mode<synchronous>, transform_indices = @transform_2, window_bounds = array<i64: 1, 8>}, {transform_indices = @transform_3, window_bounds = array<i64: 128, 8>}]} {
    %c0 = arith.constant 0 : index
    %c0_0 = arith.constant 0 : index
    %0 = vector.load %arg1[%c0, %c0_0] : memref<128x32xf32, #tpu.memory_space<vmem>>, vector<128x32xf32>
    %1 = arith.truncf %0 : vector<128x32xf32> to vector<128x32xbf16>
    %c0_1 = arith.constant 0 : index
    %c0_2 = arith.constant 0 : index
    %2 = vector.load %arg2[%c0_1, %c0_2] : memref<32x8xbf16, #tpu.memory_space<vmem>>, vector<32x8xbf16>
    %cst = arith.constant dense<0.000000e+00> : vector<128x8xf32>
    %3 = tpu.matmul %1, %2, %cst {dimension_numbers = #tpu.dot_dimension_numbers<[1], [0], [0], [1], [0, 0, 1, 1], [], []>} : vector<128x32xbf16>, vector<32x8xbf16>, vector<128x8xf32> -> vector<128x8xf32>
    %c0_3 = arith.constant 0 : index
    %c0_4 = arith.constant 0 : index
    %4 = vector.load %arg3[%c0_3, %c0_4] : memref<1x8xf32, #tpu.memory_space<vmem>>, vector<1x8xf32>
    %5 = vector.broadcast %4 : vector<1x8xf32> to vector<128x8xf32>
    %6 = arith.addf %3, %5 : vector<128x8xf32>
    %cst_5 = arith.constant 0.000000e+00 : f32
    %7 = vector.broadcast %cst_5 : f32 to vector<128x8xf32>
    %8 = arith.maximumf %6, %7 : vector<128x8xf32>
    %9 = arith.truncf %8 : vector<128x8xf32> to vector<128x8xbf16>
    %c0_6 = arith.constant 0 : index
    %c0_7 = arith.constant 0 : index
    %10 = vector.load %arg4[%c0_6, %c0_7] : memref<128x8xbf16, #tpu.memory_space<vmem>>, vector<128x8xbf16>
    tpu.vector_store %arg4[%c0_6, %c0_7], %9 {strides = array<i32>} : memref<128x8xbf16, #tpu.memory_space<vmem>>, vector<128x8xbf16>,
    return
  }
  func.func @transform_0(%arg0: i32) -> (i32, i32) {
    %c0_i32 = arith.constant 0 : i32
    %c0_i32_0 = arith.constant 0 : i32
    return %arg0, %c0_i32 : i32, i32
  }
  func.func @transform_1(%arg0: i32) -> (i32, i32) {
    %c0_i32 = arith.constant 0 : i32
    %c0_i32_0 = arith.constant 0 : i32
    %c0_i32_1 = arith.constant 0 : i32
    return %c0_i32, %c0_i32_0 : i32, i32
  }
  func.func @transform_2(%arg0: i32) -> (i32, i32) {
    %c0_i32 = arith.constant 0 : i32
    %c0_i32_0 = arith.constant 0 : i32
    %c0_i32_1 = arith.constant 0 : i32
    return %c0_i32, %c0_i32_0 : i32, i32
  }
  func.func @transform_3(%arg0: i32) -> (i32, i32) {
    %c0_i32 = arith.constant 0 : i32
    %c0_i32_0 = arith.constant 0 : i32
    return %arg0, %c0_i32 : i32, i32
  }
}

module attributes {stable_mosaic.version = 11 : i64} {
  func.func @_conv3x3_kernel(%arg0: i32, %arg1: memref<1x10x10x8xbf16, #tpu.memory_space<vmem>>, %arg2: memref<9x8x8xbf16, #tpu.memory_space<vmem>>, %arg3: memref<1x8xf32, #tpu.memory_space<vmem>>, %arg4: memref<1x8x8x8xbf16, #tpu.memory_space<vmem>>) attributes {dimension_semantics = [#tpu.dimension_semantics<parallel>], iteration_bounds = array<i64: 2>, scalar_prefetch = 0 : i64, scratch_operands = 0 : i64, tpu.core_type = #tpu.core_type<tc>, window_params = [{transform_indices = @transform_0, window_bounds = array<i64: 1, 10, 10, 8>}, {pipeline_mode = #tpu.pipeline_mode<synchronous>, transform_indices = @transform_1, window_bounds = array<i64: 9, 8, 8>}, {pipeline_mode = #tpu.pipeline_mode<synchronous>, transform_indices = @transform_2, window_bounds = array<i64: 1, 8>}, {transform_indices = @transform_3, window_bounds = array<i64: 1, 8, 8, 8>}]} {
    %c0 = arith.constant 0 : index
    %c0_0 = arith.constant 0 : index
    %0 = vector.load %arg3[%c0, %c0_0] : memref<1x8xf32, #tpu.memory_space<vmem>>, vector<1x8xf32>
    %c0_i32 = arith.constant 0 : i32
    %c8_i32 = arith.constant 8 : i32
    %1 = arith.addi %c0_i32, %c8_i32 : i32
    %c1_i32 = arith.constant 1 : i32
    scf.for %arg5 = %c0_i32 to %1 step %c1_i32  : i32 {
      %c1_i32_2 = arith.constant 1 : i32
      %2 = arith.muli %arg5, %c1_i32_2 : i32
      %c0_3 = arith.constant 0 : index
      %3 = arith.index_cast %2 : i32 to index
      %c0_4 = arith.constant 0 : index
      %c0_5 = arith.constant 0 : index
      %4 = vector.load %arg1[%c0_3, %3, %c0_4, %c0_5] : memref<1x10x10x8xbf16, #tpu.memory_space<vmem>>, vector<1x3x10x8xbf16>
      %5 = vector.shape_cast %4 : vector<1x3x10x8xbf16> to vector<3x10x8xbf16>
      %cst = arith.constant 0.000000e+00 : f32
      %6 = vector.broadcast %cst : f32 to vector<8x8xf32>
      %7 = vector.extract_strided_slice %5 {offsets = [0, 0, 0], sizes = [1, 8, 8], strides = [1, 1, 1]} : vector<3x10x8xbf16> to vector<1x8x8xbf16>
      %8 = vector.shape_cast %7 : vector<1x8x8xbf16> to vector<8x8xbf16>
      %c0_6 = arith.constant 0 : index
      %c0_7 = arith.constant 0 : index
      %c0_8 = arith.constant 0 : index
      %9 = vector.load %arg2[%c0_6, %c0_7, %c0_8] : memref<9x8x8xbf16, #tpu.memory_space<vmem>>, vector<1x8x8xbf16>
      %10 = vector.shape_cast %9 : vector<1x8x8xbf16> to vector<8x8xbf16>
      %cst_9 = arith.constant dense<0.000000e+00> : vector<8x8xf32>
      %11 = tpu.matmul %8, %10, %cst_9 {dimension_numbers = #tpu.dot_dimension_numbers<[1], [0], [0], [1], [0, 0, 1, 1], [], []>} : vector<8x8xbf16>, vector<8x8xbf16>, vector<8x8xf32> -> vector<8x8xf32>
      %12 = arith.addf %6, %11 : vector<8x8xf32>
      %13 = vector.extract_strided_slice %5 {offsets = [0, 1, 0], sizes = [1, 8, 8], strides = [1, 1, 1]} : vector<3x10x8xbf16> to vector<1x8x8xbf16>
      %14 = vector.shape_cast %13 : vector<1x8x8xbf16> to vector<8x8xbf16>
      %c1 = arith.constant 1 : index
      %c0_10 = arith.constant 0 : index
      %c0_11 = arith.constant 0 : index
      %15 = vector.load %arg2[%c1, %c0_10, %c0_11] : memref<9x8x8xbf16, #tpu.memory_space<vmem>>, vector<1x8x8xbf16>
      %16 = vector.shape_cast %15 : vector<1x8x8xbf16> to vector<8x8xbf16>
      %cst_12 = arith.constant dense<0.000000e+00> : vector<8x8xf32>
      %17 = tpu.matmul %14, %16, %cst_12 {dimension_numbers = #tpu.dot_dimension_numbers<[1], [0], [0], [1], [0, 0, 1, 1], [], []>} : vector<8x8xbf16>, vector<8x8xbf16>, vector<8x8xf32> -> vector<8x8xf32>
      %18 = arith.addf %12, %17 : vector<8x8xf32>
      %19 = vector.extract_strided_slice %5 {offsets = [0, 2, 0], sizes = [1, 8, 8], strides = [1, 1, 1]} : vector<3x10x8xbf16> to vector<1x8x8xbf16>
      %20 = vector.shape_cast %19 : vector<1x8x8xbf16> to vector<8x8xbf16>
      %c2 = arith.constant 2 : index
      %c0_13 = arith.constant 0 : index
      %c0_14 = arith.constant 0 : index
      %21 = vector.load %arg2[%c2, %c0_13, %c0_14] : memref<9x8x8xbf16, #tpu.memory_space<vmem>>, vector<1x8x8xbf16>
      %22 = vector.shape_cast %21 : vector<1x8x8xbf16> to vector<8x8xbf16>
      %cst_15 = arith.constant dense<0.000000e+00> : vector<8x8xf32>
      %23 = tpu.matmul %20, %22, %cst_15 {dimension_numbers = #tpu.dot_dimension_numbers<[1], [0], [0], [1], [0, 0, 1, 1], [], []>} : vector<8x8xbf16>, vector<8x8xbf16>, vector<8x8xf32> -> vector<8x8xf32>
      %24 = arith.addf %18, %23 : vector<8x8xf32>
      %25 = vector.extract_strided_slice %5 {offsets = [1, 0, 0], sizes = [1, 8, 8], strides = [1, 1, 1]} : vector<3x10x8xbf16> to vector<1x8x8xbf16>
      %26 = vector.shape_cast %25 : vector<1x8x8xbf16> to vector<8x8xbf16>
      %c3 = arith.constant 3 : index
      %c0_16 = arith.constant 0 : index
      %c0_17 = arith.constant 0 : index
      %27 = vector.load %arg2[%c3, %c0_16, %c0_17] : memref<9x8x8xbf16, #tpu.memory_space<vmem>>, vector<1x8x8xbf16>
      %28 = vector.shape_cast %27 : vector<1x8x8xbf16> to vector<8x8xbf16>
      %cst_18 = arith.constant dense<0.000000e+00> : vector<8x8xf32>
      %29 = tpu.matmul %26, %28, %cst_18 {dimension_numbers = #tpu.dot_dimension_numbers<[1], [0], [0], [1], [0, 0, 1, 1], [], []>} : vector<8x8xbf16>, vector<8x8xbf16>, vector<8x8xf32> -> vector<8x8xf32>
      %30 = arith.addf %24, %29 : vector<8x8xf32>
      %31 = vector.extract_strided_slice %5 {offsets = [1, 1, 0], sizes = [1, 8, 8], strides = [1, 1, 1]} : vector<3x10x8xbf16> to vector<1x8x8xbf16>
      %32 = vector.shape_cast %31 : vector<1x8x8xbf16> to vector<8x8xbf16>
      %c4 = arith.constant 4 : index
      %c0_19 = arith.constant 0 : index
      %c0_20 = arith.constant 0 : index
      %33 = vector.load %arg2[%c4, %c0_19, %c0_20] : memref<9x8x8xbf16, #tpu.memory_space<vmem>>, vector<1x8x8xbf16>
      %34 = vector.shape_cast %33 : vector<1x8x8xbf16> to vector<8x8xbf16>
      %cst_21 = arith.constant dense<0.000000e+00> : vector<8x8xf32>
      %35 = tpu.matmul %32, %34, %cst_21 {dimension_numbers = #tpu.dot_dimension_numbers<[1], [0], [0], [1], [0, 0, 1, 1], [], []>} : vector<8x8xbf16>, vector<8x8xbf16>, vector<8x8xf32> -> vector<8x8xf32>
      %36 = arith.addf %30, %35 : vector<8x8xf32>
      %37 = vector.extract_strided_slice %5 {offsets = [1, 2, 0], sizes = [1, 8, 8], strides = [1, 1, 1]} : vector<3x10x8xbf16> to vector<1x8x8xbf16>
      %38 = vector.shape_cast %37 : vector<1x8x8xbf16> to vector<8x8xbf16>
      %c5 = arith.constant 5 : index
      %c0_22 = arith.constant 0 : index
      %c0_23 = arith.constant 0 : index
      %39 = vector.load %arg2[%c5, %c0_22, %c0_23] : memref<9x8x8xbf16, #tpu.memory_space<vmem>>, vector<1x8x8xbf16>
      %40 = vector.shape_cast %39 : vector<1x8x8xbf16> to vector<8x8xbf16>
      %cst_24 = arith.constant dense<0.000000e+00> : vector<8x8xf32>
      %41 = tpu.matmul %38, %40, %cst_24 {dimension_numbers = #tpu.dot_dimension_numbers<[1], [0], [0], [1], [0, 0, 1, 1], [], []>} : vector<8x8xbf16>, vector<8x8xbf16>, vector<8x8xf32> -> vector<8x8xf32>
      %42 = arith.addf %36, %41 : vector<8x8xf32>
      %43 = vector.extract_strided_slice %5 {offsets = [2, 0, 0], sizes = [1, 8, 8], strides = [1, 1, 1]} : vector<3x10x8xbf16> to vector<1x8x8xbf16>
      %44 = vector.shape_cast %43 : vector<1x8x8xbf16> to vector<8x8xbf16>
      %c6 = arith.constant 6 : index
      %c0_25 = arith.constant 0 : index
      %c0_26 = arith.constant 0 : index
      %45 = vector.load %arg2[%c6, %c0_25, %c0_26] : memref<9x8x8xbf16, #tpu.memory_space<vmem>>, vector<1x8x8xbf16>
      %46 = vector.shape_cast %45 : vector<1x8x8xbf16> to vector<8x8xbf16>
      %cst_27 = arith.constant dense<0.000000e+00> : vector<8x8xf32>
      %47 = tpu.matmul %44, %46, %cst_27 {dimension_numbers = #tpu.dot_dimension_numbers<[1], [0], [0], [1], [0, 0, 1, 1], [], []>} : vector<8x8xbf16>, vector<8x8xbf16>, vector<8x8xf32> -> vector<8x8xf32>
      %48 = arith.addf %42, %47 : vector<8x8xf32>
      %49 = vector.extract_strided_slice %5 {offsets = [2, 1, 0], sizes = [1, 8, 8], strides = [1, 1, 1]} : vector<3x10x8xbf16> to vector<1x8x8xbf16>
      %50 = vector.shape_cast %49 : vector<1x8x8xbf16> to vector<8x8xbf16>
      %c7 = arith.constant 7 : index
      %c0_28 = arith.constant 0 : index
      %c0_29 = arith.constant 0 : index
      %51 = vector.load %arg2[%c7, %c0_28, %c0_29] : memref<9x8x8xbf16, #tpu.memory_space<vmem>>, vector<1x8x8xbf16>
      %52 = vector.shape_cast %51 : vector<1x8x8xbf16> to vector<8x8xbf16>
      %cst_30 = arith.constant dense<0.000000e+00> : vector<8x8xf32>
      %53 = tpu.matmul %50, %52, %cst_30 {dimension_numbers = #tpu.dot_dimension_numbers<[1], [0], [0], [1], [0, 0, 1, 1], [], []>} : vector<8x8xbf16>, vector<8x8xbf16>, vector<8x8xf32> -> vector<8x8xf32>
      %54 = arith.addf %48, %53 : vector<8x8xf32>
      %55 = vector.extract_strided_slice %5 {offsets = [2, 2, 0], sizes = [1, 8, 8], strides = [1, 1, 1]} : vector<3x10x8xbf16> to vector<1x8x8xbf16>
      %56 = vector.shape_cast %55 : vector<1x8x8xbf16> to vector<8x8xbf16>
      %c8 = arith.constant 8 : index
      %c0_31 = arith.constant 0 : index
      %c0_32 = arith.constant 0 : index
      %57 = vector.load %arg2[%c8, %c0_31, %c0_32] : memref<9x8x8xbf16, #tpu.memory_space<vmem>>, vector<1x8x8xbf16>
      %58 = vector.shape_cast %57 : vector<1x8x8xbf16> to vector<8x8xbf16>
      %cst_33 = arith.constant dense<0.000000e+00> : vector<8x8xf32>
      %59 = tpu.matmul %56, %58, %cst_33 {dimension_numbers = #tpu.dot_dimension_numbers<[1], [0], [0], [1], [0, 0, 1, 1], [], []>} : vector<8x8xbf16>, vector<8x8xbf16>, vector<8x8xf32> -> vector<8x8xf32>
      %60 = arith.addf %54, %59 : vector<8x8xf32>
      %61 = vector.broadcast %0 : vector<1x8xf32> to vector<8x8xf32>
      %62 = arith.addf %60, %61 : vector<8x8xf32>
      %cst_34 = arith.constant 0.000000e+00 : f32
      %63 = vector.broadcast %cst_34 : f32 to vector<8x8xf32>
      %64 = arith.maximumf %62, %63 : vector<8x8xf32>
      %65 = arith.truncf %64 : vector<8x8xf32> to vector<8x8xbf16>
      %c0_35 = arith.constant 0 : index
      %66 = arith.index_cast %arg5 : i32 to index
      %c0_36 = arith.constant 0 : index
      %c0_37 = arith.constant 0 : index
      %67 = vector.load %arg4[%c0_35, %66, %c0_36, %c0_37] : memref<1x8x8x8xbf16, #tpu.memory_space<vmem>>, vector<1x1x8x8xbf16>
      %68 = vector.shape_cast %67 : vector<1x1x8x8xbf16> to vector<8x8xbf16>
      %69 = vector.shape_cast %65 : vector<8x8xbf16> to vector<1x1x8x8xbf16>
      tpu.vector_store %arg4[%c0_35, %66, %c0_36, %c0_37], %69 {strides = array<i32>} : memref<1x8x8x8xbf16, #tpu.memory_space<vmem>>, vector<1x1x8x8xbf16>,
    }
    %c8_i32_1 = arith.constant 8 : i32
    return
  }
  func.func @transform_0(%arg0: i32) -> (i32, i32, i32, i32) {
    %c0_i32 = arith.constant 0 : i32
    %c0_i32_0 = arith.constant 0 : i32
    %c0_i32_1 = arith.constant 0 : i32
    %c0_i32_2 = arith.constant 0 : i32
    return %arg0, %c0_i32, %c0_i32_0, %c0_i32_1 : i32, i32, i32, i32
  }
  func.func @transform_1(%arg0: i32) -> (i32, i32, i32) {
    %c0_i32 = arith.constant 0 : i32
    %c0_i32_0 = arith.constant 0 : i32
    %c0_i32_1 = arith.constant 0 : i32
    %c0_i32_2 = arith.constant 0 : i32
    return %c0_i32, %c0_i32_0, %c0_i32_1 : i32, i32, i32
  }
  func.func @transform_2(%arg0: i32) -> (i32, i32) {
    %c0_i32 = arith.constant 0 : i32
    %c0_i32_0 = arith.constant 0 : i32
    %c0_i32_1 = arith.constant 0 : i32
    return %c0_i32, %c0_i32_0 : i32, i32
  }
  func.func @transform_3(%arg0: i32) -> (i32, i32, i32, i32) {
    %c0_i32 = arith.constant 0 : i32
    %c0_i32_0 = arith.constant 0 : i32
    %c0_i32_1 = arith.constant 0 : i32
    %c0_i32_2 = arith.constant 0 : i32
    return %arg0, %c0_i32, %c0_i32_0, %c0_i32_1 : i32, i32, i32, i32
  }
}

module attributes {stable_mosaic.version = 11 : i64} {
  func.func @kernel(%arg0: i32, %arg1: memref<128x8xbf16, #tpu.memory_space<vmem>>, %arg2: memref<8x32xbf16, #tpu.memory_space<vmem>>, %arg3: memref<1x32xf32, #tpu.memory_space<vmem>>, %arg4: memref<128x32xf32, #tpu.memory_space<vmem>>, %arg5: memref<128x32xf32, #tpu.memory_space<vmem>>) attributes {dimension_semantics = [#tpu.dimension_semantics<parallel>], iteration_bounds = array<i64: 1>, scalar_prefetch = 0 : i64, scratch_operands = 0 : i64, tpu.core_type = #tpu.core_type<tc>, window_params = [{transform_indices = @transform_0, window_bounds = array<i64: 128, 8>}, {pipeline_mode = #tpu.pipeline_mode<synchronous>, transform_indices = @transform_1, window_bounds = array<i64: 8, 32>}, {pipeline_mode = #tpu.pipeline_mode<synchronous>, transform_indices = @transform_2, window_bounds = array<i64: 1, 32>}, {transform_indices = @transform_3, window_bounds = array<i64: 128, 32>}, {transform_indices = @transform_4, window_bounds = array<i64: 128, 32>}]} {
    %c0 = arith.constant 0 : index
    %c0_0 = arith.constant 0 : index
    %0 = vector.load %arg1[%c0, %c0_0] : memref<128x8xbf16, #tpu.memory_space<vmem>>, vector<128x8xbf16>
    %c0_1 = arith.constant 0 : index
    %c0_2 = arith.constant 0 : index
    %1 = vector.load %arg2[%c0_1, %c0_2] : memref<8x32xbf16, #tpu.memory_space<vmem>>, vector<8x32xbf16>
    %cst = arith.constant dense<0.000000e+00> : vector<128x32xf32>
    %2 = tpu.matmul %0, %1, %cst {dimension_numbers = #tpu.dot_dimension_numbers<[1], [0], [0], [1], [0, 0, 1, 1], [], []>} : vector<128x8xbf16>, vector<8x32xbf16>, vector<128x32xf32> -> vector<128x32xf32>
    %c0_3 = arith.constant 0 : index
    %c0_4 = arith.constant 0 : index
    %3 = vector.load %arg3[%c0_3, %c0_4] : memref<1x32xf32, #tpu.memory_space<vmem>>, vector<1x32xf32>
    %4 = vector.broadcast %3 : vector<1x32xf32> to vector<128x32xf32>
    %5 = arith.addf %2, %4 : vector<128x32xf32>
    %c0_5 = arith.constant 0 : index
    %c0_6 = arith.constant 0 : index
    %6 = vector.load %arg4[%c0_5, %c0_6] : memref<128x32xf32, #tpu.memory_space<vmem>>, vector<128x32xf32>
    %7 = arith.addf %5, %6 : vector<128x32xf32>
    %cst_7 = arith.constant 0.000000e+00 : f32
    %8 = vector.broadcast %cst_7 : f32 to vector<128x32xf32>
    %9 = arith.maximumf %7, %8 : vector<128x32xf32>
    %c0_8 = arith.constant 0 : index
    %c0_9 = arith.constant 0 : index
    %10 = vector.load %arg5[%c0_8, %c0_9] : memref<128x32xf32, #tpu.memory_space<vmem>>, vector<128x32xf32>
    tpu.vector_store %arg5[%c0_8, %c0_9], %9 {strides = array<i32>} : memref<128x32xf32, #tpu.memory_space<vmem>>, vector<128x32xf32>,
    return
  }
  func.func @transform_0(%arg0: i32) -> (i32, i32) {
    %c0_i32 = arith.constant 0 : i32
    %c0_i32_0 = arith.constant 0 : i32
    return %arg0, %c0_i32 : i32, i32
  }
  func.func @transform_1(%arg0: i32) -> (i32, i32) {
    %c0_i32 = arith.constant 0 : i32
    %c0_i32_0 = arith.constant 0 : i32
    %c0_i32_1 = arith.constant 0 : i32
    return %c0_i32, %c0_i32_0 : i32, i32
  }
  func.func @transform_2(%arg0: i32) -> (i32, i32) {
    %c0_i32 = arith.constant 0 : i32
    %c0_i32_0 = arith.constant 0 : i32
    %c0_i32_1 = arith.constant 0 : i32
    return %c0_i32, %c0_i32_0 : i32, i32
  }
  func.func @transform_3(%arg0: i32) -> (i32, i32) {
    %c0_i32 = arith.constant 0 : i32
    %c0_i32_0 = arith.constant 0 : i32
    return %arg0, %c0_i32 : i32, i32
  }
  func.func @transform_4(%arg0: i32) -> (i32, i32) {
    %c0_i32 = arith.constant 0 : i32
    %c0_i32_0 = arith.constant 0 : i32
    return %arg0, %c0_i32 : i32, i32
  }
}

</mosaic_0001>

<bundles_post_ra>
// kernel: bottleneck_forward.3
= control target key start
LH: loop header
LB: loop body
LE: loop exit
PB: predicated region body
PF: predicated region fallthrough
CT: control target
= control target key end

     0   :  { %vm62_vm0 = vcmask 261120   ;;  %vm264_vm1 = vcmask 60416   ;;  %s531_s1 = inlined_call_operand.vmem [shape: bf16[32,8], index: 1, kind: input, shape index: {}]   ;;  %s532_s0 = inlined_call_operand.vmem [shape: f32[128,32], index: 0, kind: input, shape index: {}]   ;;  %s533_s2 = inlined_call_operand.vmem [shape: f32[1,8], index: 2, kind: input, shape index: {}]   ;;  %s534_s3 = inlined_call_operand.vmem [shape: bf16[128,8], index: 3, kind: output, shape index: {}]  }
   0x1   :  { %v362_v0 = vld [vmem:[%s531_s1 + $0x8] sm:$0xff]   ;;  %v363_v1 = vld [vmem:[%s531_s1] sm:$0xff]   ;;  %v17_v7 = vld [vmem:[%s532_s0 + $0x10] sm:$0xff] }
   0x2   :  { %338 = vmatprep.subr.bf16.mxu0 %v362_v0  ;;  %358 = vmatprep.subr.bf16.mxu1 %v362_v0  ;;  %v15_v2 = vld [vmem:[%s532_s0] sm:$0xff]  ;;  %v16_v3 = vld [vmem:[%s532_s0 + $0x8] sm:$0xff]  ;;  %v18_v8 = vld [vmem:[%s532_s0 + $0x18] sm:$0xff] }
   0x3   :  { %v23_v4 = vld [vmem:[%s532_s0 + $0x40] sm:$0xff]  ;;  %339 = vmatpush3.bf16.msra.mxu0 %v362_v0  ;;  %360 = vmatpush3.bf16.msra.mxu1 %v362_v0  ;;  %v31_v5 = vpack.c.bf16 %v16_v3, %v15_v2  ;;  %v24_v6 = vld [vmem:[%s532_s0 + $0x48] sm:$0xff]  ;;  %v25_v10 = vld [vmem:[%s532_s0 + $0x50] sm:$0xff]  ;;  %v32_v16 = vpack.c.bf16 %v18_v8, %v17_v7 }
   0x4   :  { %340 = vmatprep.subr.bf16.mxu0 %v363_v1  ;;  %359 = vmatprep.subr.bf16.mxu1 %v363_v1  ;;  %v35_v9 = vpack.c.bf16 %v24_v6, %v23_v4  ;;  %v26_v11 = vld [vmem:[%s532_s0 + $0x58] sm:$0xff]  ;;  %v19_v12 = vld [vmem:[%s532_s0 + $0x20] sm:$0xff]  ;;  %v20_v13 = vld [vmem:[%s532_s0 + $0x28] sm:$0xff] }
   0x5   :  { %342 = vmatprep.mubr.msk.bf16.mxu0 %vm62_vm0, %v31_v5  ;;  %v27_v14 = vld [vmem:[%s532_s0 + $0x60] sm:$0xff]  ;;  %v28_v15 = vld [vmem:[%s532_s0 + $0x68] sm:$0xff]  ;;  %v36_v17 = vpack.c.bf16 %v26_v11, %v25_v10  ;;  %v33_v18 = vpack.c.bf16 %v20_v13, %v19_v12  ;;  %v21_v20 = vld [vmem:[%s532_s0 + $0x30] sm:$0xff] }
   0x6   :  { %350 = vmatprep.mubr.msk.bf16.mxu1 %vm62_vm0, %v35_v9  ;;  %v37_v19 = vpack.c.bf16 %v28_v15, %v27_v14  ;;  %v22_v21 = vld [vmem:[%s532_s0 + $0x38] sm:$0xff]  ;;  %v29_v22 = vld [vmem:[%s532_s0 + $0x70] sm:$0xff]  ;;  %v449_v26 = vld [vmem:[%s533_s2] ss:$0 sm:$0xff] }
   0x7   :  { %341 = vmatpush3.bf16.msra.mxu0 %v363_v1  ;;  %361 = vmatpush3.bf16.msra.mxu1 %v363_v1  ;;  %v30_v23 = vld [vmem:[%s532_s0 + $0x78] sm:$0xff]  ;;  %v34_v24 = vpack.c.bf16 %v22_v21, %v21_v20 }
   0x8   :  { %v38_v25 = vpack.c.bf16 %v30_v23, %v29_v22 }
   0xa   :  { %343 = vmatmul.mubr.msk.bf16.vlgmr.msra.gmra.mxu0 %vm62_vm0, %v32_v16  ;;  %351 = vmatmul.mubr.msk.bf16.vlgmr.msra.gmra.mxu1 %vm62_vm0, %v36_v17 }
   0xb   :  { %346 = vmatprep.mubr.msk.bf16.mxu0 %vm62_vm0, %v33_v18  ;;  %354 = vmatprep.mubr.msk.bf16.mxu1 %vm62_vm0, %v37_v19 }
  0x12   :  { %347 = vmatmul.mubr.msk.bf16.gmra.mxu0 %vm62_vm0, %v34_v24  ;;  %355 = vmatmul.mubr.msk.bf16.gmra.mxu1 %vm62_vm0, %v38_v25 }
  0xca   :  { %v344_v27 = vpop.f32.mrf.mxu0  ;;  %v352_v28 = vpop.f32.mrf.mxu1 }
  0xcb   :  { %v130_v29 = vadd.f32 %v344_v27, %v449_v26  ;;  %v162_v30 = vadd.f32 %v352_v28, %v449_v26 }
  0xcc   :  { %v121_v31 = vpop.f32.mrf.mxu0  ;;  %v153_v32 = vpop.f32.mrf.mxu1 }
  0xcd   :  { %v186_v33 = vmax.f32 %v130_v29, 0.0  ;;  %v194_v34 = vmax.f32 %v162_v30, 0.0  ;;  %v122_v35 = vadd.f32 %v449_v26, %v121_v31  ;;  %v154_v36 = vadd.f32 %v449_v26, %v153_v32 }
  0xce   :  { %v345_v37 = vpop.f32.mrf.mxu0  ;;  %v353_v38 = vpop.f32.mrf.mxu1 }
  0xcf   :  { %v314_v39 = vpack.c.bf16 %v186_v33, %v186_v33  ;;  %v322_v40 = vpack.c.bf16 %v194_v34, %v194_v34  ;;  %v184_v41 = vmax.f32 %v122_v35, 0.0  ;;  %v192_v42 = vmax.f32 %v154_v36, 0.0 }
  0xd0   :  { %v133_v43 = vadd.f32 %v345_v37, %v449_v26  ;;  %v165_v44 = vadd.f32 %v353_v38, %v449_v26  ;;  %v124_v45 = vpop.f32.mrf.mxu0  ;;  %v156_v46 = vpop.f32.mrf.mxu1 }
  0xd1   :  { %267 = vst.msk [vmem:[%s534_s3 + $0x8] sm:$0xf] %vm264_vm1, %v314_v39  ;;  %275 = vst.msk [vmem:[%s534_s3 + $0x28] sm:$0xf] %vm264_vm1, %v322_v40  ;;  %v312_v47 = vpack.c.bf16 %v184_v41, %v184_v41  ;;  %v320_v48 = vpack.c.bf16 %v192_v42, %v192_v42  ;;  %v125_v49 = vadd.f32 %v449_v26, %v124_v45 }
  0xd2   :  { %v157_v50 = vadd.f32 %v449_v26, %v156_v46  ;;  %v187_v51 = vmax.f32 %v133_v43, 0.0  ;;  %v195_v52 = vmax.f32 %v165_v44, 0.0  ;;  %v348_v53 = vpop.f32.mrf.mxu0  ;;  %v356_v54 = vpop.f32.mrf.mxu1 }
  0xd3   :  { %265 = vst.msk [vmem:[%s534_s3] sm:$0xf] %vm264_vm1, %v312_v47  ;;  %273 = vst.msk [vmem:[%s534_s3 + $0x20] sm:$0xf] %vm264_vm1, %v320_v48  ;;  %v185_v55 = vmax.f32 %v125_v49, 0.0  ;;  %v146_v57 = vadd.f32 %v348_v53, %v449_v26  ;;  %v178_v58 = vadd.f32 %v356_v54, %v449_v26 }
  0xd4   :  { %v193_v56 = vmax.f32 %v157_v50, 0.0  ;;  %v315_v59 = vpack.c.bf16 %v187_v51, %v187_v51  ;;  %v323_v60 = vpack.c.bf16 %v195_v52, %v195_v52  ;;  %v137_v61 = vpop.f32.mrf.mxu0  ;;  %v169_v62 = vpop.f32.mrf.mxu1 }
  0xd5   :  { %v313_v63 = vpack.c.bf16 %v185_v55, %v185_v55  ;;  %v190_v1 = vmax.f32 %v146_v57, 0.0  ;;  %v198_v2 = vmax.f32 %v178_v58, 0.0  ;;  %v138_v3 = vadd.f32 %v449_v26, %v137_v61 }
  0xd6   :  { %v321_v0 = vpack.c.bf16 %v193_v56, %v193_v56  ;;  %268 = vst.msk [vmem:[%s534_s3 + $0xc] sm:$0xf] %vm264_vm1, %v315_v59  ;;  %276 = vst.msk [vmem:[%s534_s3 + $0x2c] sm:$0xf] %vm264_vm1, %v323_v60  ;;  %v170_v4 = vadd.f32 %v449_v26, %v169_v62  ;;  %v349_v5 = vpop.f32.mrf.mxu0  ;;  %v357_v6 = vpop.f32.mrf.mxu1 }
  0xd7   :  { %266 = vst.msk [vmem:[%s534_s3 + $0x4] sm:$0xf] %vm264_vm1, %v313_v63  ;;  %v318_v7 = vpack.c.bf16 %v190_v1, %v190_v1  ;;  %v326_v8 = vpack.c.bf16 %v198_v2, %v198_v2  ;;  %v149_v9 = vadd.f32 %v349_v5, %v449_v26  ;;  %v181_v10 = vadd.f32 %v357_v6, %v449_v26 }
  0xd8   :  { %274 = vst.msk [vmem:[%s534_s3 + $0x24] sm:$0xf] %vm264_vm1, %v321_v0  ;;  %v188_v11 = vmax.f32 %v138_v3, 0.0  ;;  %v196_v12 = vmax.f32 %v170_v4, 0.0  ;;  %v140_v13 = vpop.f32.mrf.mxu0  ;;  %v172_v14 = vpop.f32.mrf.mxu1 }
  0xd9   :  { %271 = vst.msk [vmem:[%s534_s3 + $0x18] sm:$0xf] %vm264_vm1, %v318_v7  ;;  %279 = vst.msk [vmem:[%s534_s3 + $0x38] sm:$0xf] %vm264_vm1, %v326_v8  ;;  %v191_v15 = vmax.f32 %v149_v9, 0.0  ;;  %v199_v16 = vmax.f32 %v181_v10, 0.0  ;;  %v141_v17 = vadd.f32 %v449_v26, %v140_v13  ;;  %v173_v18 = vadd.f32 %v449_v26, %v172_v14 }
  0xda   :  { %v316_v19 = vpack.c.bf16 %v188_v11, %v188_v11  ;;  %v324_v20 = vpack.c.bf16 %v196_v12, %v196_v12 }
  0xdb   :  { %v319_v21 = vpack.c.bf16 %v191_v15, %v191_v15  ;;  %v327_v22 = vpack.c.bf16 %v199_v16, %v199_v16  ;;  %v189_v23 = vmax.f32 %v141_v17, 0.0  ;;  %v197_v24 = vmax.f32 %v173_v18, 0.0 }
  0xdc   :  { %269 = vst.msk [vmem:[%s534_s3 + $0x10] sm:$0xf] %vm264_vm1, %v316_v19  ;;  %277 = vst.msk [vmem:[%s534_s3 + $0x30] sm:$0xf] %vm264_vm1, %v324_v20 }
  0xdd   :  { %272 = vst.msk [vmem:[%s534_s3 + $0x1c] sm:$0xf] %vm264_vm1, %v319_v21  ;;  %280 = vst.msk [vmem:[%s534_s3 + $0x3c] sm:$0xf] %vm264_vm1, %v327_v22  ;;  %v317_v25 = vpack.c.bf16 %v189_v23, %v189_v23  ;;  %v325_v26 = vpack.c.bf16 %v197_v24, %v197_v24 }
  0xdf   :  { %270 = vst.msk [vmem:[%s534_s3 + $0x14] sm:$0xf] %vm264_vm1, %v317_v25  ;;  %278 = vst.msk [vmem:[%s534_s3 + $0x34] sm:$0xf] %vm264_vm1, %v325_v26 }

// kernel: bottleneck_forward.5
= control target key start
LH: loop header
LB: loop body
LE: loop exit
PB: predicated region body
PF: predicated region fallthrough
CT: control target
= control target key end

     0   :  { %vm108_vm0 = vcmask 1043456   ;;  %vm83_vm1 = vcmask 64512   ;;  %s522_s0 = inlined_call_operand.vmem [shape: bf16[128,8], index: 0, kind: input, shape index: {}]   ;;  %s523_s1 = inlined_call_operand.vmem [shape: bf16[8,32], index: 1, kind: input, shape index: {}]   ;;  %s524_s2 = inlined_call_operand.vmem [shape: f32[1,32], index: 2, kind: input, shape index: {}]   ;;  %s525_s3 = inlined_call_operand.vmem [shape: f32[128,32], index: 3, kind: input, shape index: {}]   ;;  %s526_s4 = inlined_call_operand.hbm [shape: f32[128,32], index: 4, kind: output, shape index: {}]  }
   0x1   :  { %v35_v0 = vld [vmem:[%s523_s1] sm:$0xf]  ;;  %v343_v4 = vld [vmem:[%s522_s0 + $0x8] sm:$0xff]   ;;  %v345_v6 = vld [vmem:[%s522_s0 + $0x10] sm:$0xff]  }
   0x2   :  { %v341_v1 = vld [vmem:[%s522_s0] sm:$0xff]   ;;  %336 = vmatprep.subr.msk.bf16.mxu0 %vm108_vm0, %v35_v0  ;;  %337 = vmatprep.subr.msk.bf16.mxu1 %vm108_vm0, %v35_v0  ;;  %v110_v2 = vsel %vm108_vm0, %v35_v0, 0  ;;  %v344_v5 = vld [vmem:[%s522_s0 + $0x28] sm:$0xff]   ;;  %v346_v7 = vld [vmem:[%s522_s0 + $0x30] sm:$0xff]  }
   0x3   :  { %317 = vmatpush3.bf16.msra.mxu0 %v110_v2  ;;  %335 = vmatpush3.bf16.msra.mxu1 %v110_v2  ;;  %v342_v3 = vld [vmem:[%s522_s0 + $0x20] sm:$0xff]  }
   0x4   :  { %318 = vmatprep.mubr.msk.bf16.mxu0 %vm83_vm1, %v341_v1  ;;  %326 = vmatprep.mubr.msk.bf16.mxu1 %vm83_vm1, %v342_v3 }
   0x6   :  { %319 = vmatmul.mubr.msk.bf16.vlgmr.msra.gmra.mxu0 %vm83_vm1, %v343_v4  ;;  %327 = vmatmul.mubr.msk.bf16.vlgmr.msra.gmra.mxu1 %vm83_vm1, %v344_v5 }
   0x7   :  { %322 = vmatprep.mubr.msk.bf16.mxu0 %vm83_vm1, %v345_v6  ;;  %330 = vmatprep.mubr.msk.bf16.mxu1 %vm83_vm1, %v346_v7 }
   0x8   :  { %9 = vsyncpa [#allocation3], 0  ;;  %v347_v8 = vld [vmem:[%s522_s0 + $0x18] sm:$0xff]   ;;  %v437_v10 = vld [vmem:[%s524_s2] ss:$0 sm:$0xff]  ;;  %vm257_vm2 = vcmask 261120  }
   0x9   :  { %v348_v9 = vld [vmem:[%s522_s0 + $0x38] sm:$0xff]   ;;  %v211_v12 = vld [vmem:[%s525_s3 + $0x10] sm:$0xff]  ;;  %v209_v18 = vld [vmem:[%s525_s3] sm:$0xff]  ;;  %s371_s11 = smov [#allocation2]  }
   0xa   :  { %v219_v15 = vld [vmem:[%s525_s3 + $0x50] sm:$0xff]  ;;  %v217_v22 = vld [vmem:[%s525_s3 + $0x40] sm:$0xff]  ;;  %v212_v26 = vld [vmem:[%s525_s3 + $0x18] sm:$0xff]  ;;  %s279_s0 = sshll.u32 %s371_s11, 4  ;;  %s280_s0 = int_to_ptr.vmem [resolvable:$true] %s279_s0 }
   0xb   :  { %v220_v31 = vld [vmem:[%s525_s3 + $0x58] sm:$0xff]  ;;  %v210_v36 = vld [vmem:[%s525_s3 + $0x8] sm:$0xff]  ;;  %v215_v46 = vld [vmem:[%s525_s3 + $0x30] sm:$0xff]  ;;  %p354_p1 = scmp.lt.s32.totalorder %s280_s0, %s280_s0 }
   0xc   :  { %v218_v41 = vld [vmem:[%s525_s3 + $0x48] sm:$0xff]  ;;  %v223_v51 = vld [vmem:[%s525_s3 + $0x70] sm:$0xff]  ;;  %v213_v56 = vld [vmem:[%s525_s3 + $0x20] sm:$0xff] }
   0xd   :  { %v221_v61 = vld [vmem:[%s525_s3 + $0x60] sm:$0xff]  ;;  %v216_v2 = vld [vmem:[%s525_s3 + $0x38] sm:$0xff] }
   0xe   :  { %323 = vmatmul.mubr.msk.bf16.gmra.mxu0 %vm83_vm1, %v347_v8  ;;  %331 = vmatmul.mubr.msk.bf16.gmra.mxu1 %vm83_vm1, %v348_v9  ;;  %v224_v7 = vld [vmem:[%s525_s3 + $0x78] sm:$0xff] }
  0xc6   :  { %v320_v11 = vpop.f32.mrf.mxu0  ;;  %v328_v14 = vpop.f32.mrf.mxu1 }
  0xc7   :  { %v155_v13 = vadd.f32 %v320_v11, %v437_v10  ;;  %v187_v16 = vadd.f32 %v328_v14, %v437_v10 }
  0xc8   :  { %v146_v17 = vpop.f32.mrf.mxu0  ;;  %v178_v21 = vpop.f32.mrf.mxu1 }
  0xc9   :  { %v227_v19 = vadd.f32 %v211_v12, %v155_v13  ;;  %v147_v20 = vadd.f32 %v437_v10, %v146_v17  ;;  %v235_v23 = vadd.f32 %v219_v15, %v187_v16  ;;  %v179_v24 = vadd.f32 %v437_v10, %v178_v21  ;;  %v214_v13 = vld [vmem:[%s525_s3 + $0x28] sm:$0xff] }
  0xca   :  { %v321_v25 = vpop.f32.mrf.mxu0  ;;  %v329_v30 = vpop.f32.mrf.mxu1 }
  0xcb   :  { %v243_v27 = vmax.f32 %v227_v19, 0.0  ;;  %v225_v28 = vadd.f32 %v209_v18, %v147_v20  ;;  %v158_v29 = vadd.f32 %v321_v25, %v437_v10  ;;  %v251_v32 = vmax.f32 %v235_v23, 0.0  ;;  %v222_v18 = vld [vmem:[%s525_s3 + $0x68] sm:$0xff]  ;;  %s349_s3 = scalar_lea.vmem %s280_s0, 2048 }
  0xcc   :  { %v233_v33 = vadd.f32 %v217_v22, %v179_v24  ;;  %v190_v34 = vadd.f32 %v329_v30, %v437_v10  ;;  %v149_v35 = vpop.f32.mrf.mxu0  ;;  %v181_v40 = vpop.f32.mrf.mxu1  ;;  %p350_p0 = scmp.ne.s32.totalorder %s280_s0, %s349_s3  ;;  %p355_p2 = scmp.lt.s32.totalorder %s349_s3, %s349_s3 }
  0xcd   :  { %260 = vst.msk [vmem:[#allocation2 + $0x10] sm:$0xff] %vm257_vm2, %v243_v27  ;;  %v241_v37 = vmax.f32 %v225_v28, 0.0  ;;  %v228_v38 = vadd.f32 %v212_v26, %v158_v29  ;;  %v150_v39 = vadd.f32 %v437_v10, %v149_v35  ;;  %268 = vst.msk [vmem:[#allocation2 + $0x50] sm:$0xff] %vm257_vm2, %v251_v32  ;;  %v182_v44 = vadd.f32 %v437_v10, %v181_v40 }
  0xce   :  { %v249_v42 = vmax.f32 %v233_v33, 0.0  ;;  %v236_v43 = vadd.f32 %v220_v31, %v190_v34  ;;  %v324_v45 = vpop.f32.mrf.mxu0  ;;  %v332_v50 = vpop.f32.mrf.mxu1  ;;  %p356_p3 = por %p355_p2, %p354_p1 }
  0xcf   :  { %258 = vst.msk [vmem:[#allocation2] sm:$0xff] %vm257_vm2, %v241_v37  ;;  %v244_v47 = vmax.f32 %v228_v38, 0.0  ;;  %v226_v48 = vadd.f32 %v210_v36, %v150_v39  ;;  %v171_v49 = vadd.f32 %v324_v45, %v437_v10  ;;  %v234_v53 = vadd.f32 %v218_v41, %v182_v44 }
  0xd0   :  { %266 = vst.msk [vmem:[#allocation2 + $0x40] sm:$0xff] %vm257_vm2, %v249_v42  ;;  %v252_v52 = vmax.f32 %v236_v43, 0.0  ;;  %v203_v54 = vadd.f32 %v332_v50, %v437_v10  ;;  %v162_v55 = vpop.f32.mrf.mxu0  ;;  %v194_v60 = vpop.f32.mrf.mxu1  ;;  %p357_p4 = pnand %p356_p3, %p350_p0 }
  0xd1   :  { %261 = vst.msk [vmem:[#allocation2 + $0x18] sm:$0xff] %vm257_vm2, %v244_v47  ;;  %v242_v57 = vmax.f32 %v226_v48, 0.0  ;;  %v231_v58 = vadd.f32 %v215_v46, %v171_v49  ;;  %v163_v59 = vadd.f32 %v437_v10, %v162_v55  ;;  %v250_v62 = vmax.f32 %v234_v53, 0.0 }
  0xd2   :  { %269 = vst.msk [vmem:[#allocation2 + $0x58] sm:$0xff] %vm257_vm2, %v252_v52  ;;  %v239_v63 = vadd.f32 %v223_v51, %v203_v54  ;;  %v195_v0 = vadd.f32 %v437_v10, %v194_v60  ;;  %v325_v1 = vpop.f32.mrf.mxu0  ;;  %v333_v6 = vpop.f32.mrf.mxu1 }
  0xd3   :  { %259 = vst.msk [vmem:[#allocation2 + $0x8] sm:$0xff] %vm257_vm2, %v242_v57  ;;  %v247_v3 = vmax.f32 %v231_v58, 0.0  ;;  %v229_v4 = vadd.f32 %v213_v56, %v163_v59  ;;  %v174_v5 = vadd.f32 %v325_v1, %v437_v10  ;;  %267 = vst.msk [vmem:[#allocation2 + $0x48] sm:$0xff] %vm257_vm2, %v250_v62  ;;  %v206_v11 = vadd.f32 %v333_v6, %v437_v10 }
  0xd4   :  { %v255_v8 = vmax.f32 %v239_v63, 0.0  ;;  %v237_v9 = vadd.f32 %v221_v61, %v195_v0  ;;  %v165_v12 = vpop.f32.mrf.mxu0  ;;  %v197_v17 = vpop.f32.mrf.mxu1 }
  0xd5   :  { %264 = vst.msk [vmem:[#allocation2 + $0x30] sm:$0xff] %vm257_vm2, %v247_v3  ;;  %v245_v14 = vmax.f32 %v229_v4, 0.0  ;;  %v232_v15 = vadd.f32 %v216_v2, %v174_v5  ;;  %v166_v16 = vadd.f32 %v437_v10, %v165_v12  ;;  %v240_v20 = vadd.f32 %v224_v7, %v206_v11 }
  0xd6   :  { %272 = vst.msk [vmem:[#allocation2 + $0x70] sm:$0xff] %vm257_vm2, %v255_v8  ;;  %v253_v19 = vmax.f32 %v237_v9, 0.0  ;;  %v198_v21 = vadd.f32 %v437_v10, %v197_v17 }
  0xd7   :  { %262 = vst.msk [vmem:[#allocation2 + $0x20] sm:$0xff] %vm257_vm2, %v245_v14  ;;  %v248_v22 = vmax.f32 %v232_v15, 0.0  ;;  %v230_v23 = vadd.f32 %v214_v13, %v166_v16  ;;  %v256_v24 = vmax.f32 %v240_v20, 0.0 }
  0xd8   :  { %270 = vst.msk [vmem:[#allocation2 + $0x60] sm:$0xff] %vm257_vm2, %v253_v19  ;;  %v238_v25 = vadd.f32 %v222_v18, %v198_v21 }
  0xd9   :  { %265 = vst.msk [vmem:[#allocation2 + $0x38] sm:$0xff] %vm257_vm2, %v248_v22  ;;  %v246_v26 = vmax.f32 %v230_v23, 0.0  ;;  %273 = vst.msk [vmem:[#allocation2 + $0x78] sm:$0xff] %vm257_vm2, %v256_v24 }
  0xda   :  { %v254_v27 = vmax.f32 %v238_v25, 0.0 }
  0xdb   :  { %263 = vst.msk [vmem:[#allocation2 + $0x28] sm:$0xff] %vm257_vm2, %v246_v26 }
  0xdc   :  { %271 = vst.msk [vmem:[#allocation2 + $0x68] sm:$0xff] %vm257_vm2, %v254_v27 }
  0xdd   :  { %360 = shalt.err (!%p357_p4)
}
  0xde   :  { %s372_s12 = smov 128   ;;  %s373_s2 = smov 8  }
  0xdf   :  { %285 = dma.vmem_to_hbm [thread:$0]  %s280_s0, 2048, %s526_s4, [#allocation3], %s372_s12, %s372_s12, %s373_s2  }
  0xe0   :  { %369 = dma.done.wait [#allocation3], 2048  }
  0xe1   :  { %370 = vsyncadd [#allocation3], 4294965248 }
  0xe2   :  { %289 = vsyncpa [#allocation3], 1 }

// kernel: bottleneck_forward.4
= control target key start
LH: loop header
LB: loop body
LE: loop exit
PB: predicated region body
PF: predicated region fallthrough
CT: control target
= control target key end

     0   :  { %s912_s12 = smov 0   ;;  %s1023_s0 = inlined_call_operand.vmem [shape: bf16[2,10,10,8], index: 0, kind: input, shape index: {}]   ;;  %s1024_s1 = inlined_call_operand.vmem [shape: bf16[9,8,8], index: 1, kind: input, shape index: {}]   ;;  %s1025_s2 = inlined_call_operand.vmem [shape: f32[1,8], index: 2, kind: input, shape index: {}]   ;;  %s1026_s3 = inlined_call_operand.vmem [shape: bf16[2,8,8,8], index: 3, kind: output, shape index: {}]  }
   0x1 LB: > { %s744_s13 = sadd.s32 4294967295, %s884_s12   ;;  %p748_p0 = scmp.ge.s32.totalorder %s884_s12, 1  ;;  %s884_s12 = sphi %s912_s12, %s13_s12  }
   0x2   : > { %p137_p1 = scmp.lt.s32.totalorder %s884_s12, 3 }
   0x4   : > { %p138_p2 = pnand %p748_p0, %p137_p1 }
   0x5   : > { %p161_p3 = scmp.lt.s32.totalorder (!%p138_p2), %s744_s13, 1  ;;  %s935_s24 = smov (!%p138_p2), 0  }
   0x6   : > { %141 = sbr.rel (%p138_p2) target bundleno = 261 (0x105), region = 32 }
   0xb   : > { %v923_v0 = vld [vmem:[%s1025_s2] ss:$0 sm:$0xff]  ;;  %s1028_s13 = smov (!%p161_p3, %s744_s13), 1 }
   0xc   : > { %s852_s16 = smul.u32 80, %s1028_s13  ;;  %s778_s17 = sshll.u32 %s1028_s13, 5 }
   0xd   : > { %s928_s20 = scalar_lea.vmem %s1026_s3, %s778_s17 }
   0xe   : > { %s933_s23 = scalar_lea.vmem %s1023_s0, %s852_s16 }
   0xf LB: >> { %v754_v1 = vld [vmem:[%s1024_s1 + $0x4] sm:$0xf]  ;;  %vm207_vm0 = vcmask 1043456   ;;  %v188_v2 = vld [vmem:[%s1024_s1] sm:$0xf]  ;;  %v890_v3 = vmov 0.0   ;;  %s888_s24 = sphi %s935_s24, %s178_s24  }
  0x10   : >> { %798 = vmatprep.subr.bf16.mxu0 %v890_v3  ;;  %v209_v4 = vsel %vm207_vm0, %v754_v1, 0  ;;  %804 = vmatprep.subr.bf16.mxu1 %v890_v3  ;;  %v255_v5 = vsel %vm207_vm0, %v188_v2, 0  ;;  %s779_s29 = sshll.u32 %s888_s24, 3  ;;  %vm203_vm1 = vcmask 64512   ;;  %v760_v6 = vld [vmem:[%s1024_s1 + $0xc] sm:$0xf] }
  0x11   : >> { %799 = vmatpush3.bf16.msra.mxu0 %v209_v4  ;;  %805 = vmatpush3.bf16.msra.mxu1 %v255_v5  ;;  %vm891_vm2 = vmmov 0   ;;  %s181_s5 = scalar_lea.vmem %s933_s23, %s779_s29  ;;  %v353_v7 = vsel %vm207_vm0, %v760_v6, 0  ;;  %v758_v13 = vld [vmem:[%s1024_s1 + $0x8] sm:$0xf]  ;;  %v765_v16 = vld [vmem:[%s1024_s1 + $0x14] sm:$0xf] }
  0x12   : >> { %800 = vmatprep.mubr.msk.bf16.mxu0 %vm891_vm2, %v890_v3  ;;  %806 = vmatprep.mubr.msk.bf16.mxu1 %vm891_vm2, %v890_v3  ;;  %v182_v8 = vld [vmem:[%s181_s5] sm:$0xf]  ;;  %v183_v9 = vld [vmem:[%s181_s5 + $0x4] sm:$0x1]  ;;  %v184_v15 = vld [vmem:[%s181_s5 + $0x8] sm:$0xf] }
  0x13   : >> { %810 = vmatprep.subr.bf16.mxu0 %v890_v3  ;;  %816 = vmatprep.subr.bf16.mxu1 %v890_v3  ;;  %v755_v10 = vcombine.low %v182_v8, %v183_v9  ;;  %v185_v17 = vld [vmem:[%s181_s5 + $0xc] sm:$0x1]  ;;  %v186_v18 = vld [vmem:[%s181_s5 + $0x10] sm:$0xf]  ;;  %v187_v19 = vld [vmem:[%s181_s5 + $0x14] sm:$0x1] }
  0x14   : >> { %807 = vmatmul.mubr.msk.bf16.vlgmr.msra.gmra.mxu1 %vm203_vm1, %v182_v8  ;;  %v304_v21 = vsel %vm207_vm0, %v758_v13, 0  ;;  %v464_v22 = vsel %vm207_vm0, %v765_v16, 0  ;;  %v763_v23 = vcombine.low %v184_v15, %v185_v17  ;;  %v770_v24 = vcombine.low %v186_v18, %v187_v19  ;;  %v762_v25 = vld [vmem:[%s1024_s1 + $0x10] sm:$0xf]  ;;  %v769_v29 = vld [vmem:[%s1024_s1 + $0x1c] sm:$0xf] }
  0x15   : >> { %817 = vmatpush3.bf16.msra.mxu1 %v353_v7  ;;  %818 = vmatprep.mubr.msk.bf16.mxu1 %vm891_vm2, %v890_v3  ;;  %v197_v11 = vshrl.u32 %v755_v10, 16  ;;  %v199_v12 = vshll.u32 %v755_v10, 16  ;;  %v299_v26 = vrot.slane %v755_v10, 1  ;;  %v414_v31 = vsel %vm207_vm0, %v762_v25, 0  ;;  %v767_v37 = vld [vmem:[%s1024_s1 + $0x18] sm:$0xf] }
  0x16   : >> { %828 = vmatprep.subr.bf16.mxu1 %v890_v3  ;;  %v406_v27 = vshll.u32 %v763_v23, 16  ;;  %v459_v28 = vrot.slane %v763_v23, 1  ;;  %v566_v30 = vshll.u32 %v770_v24, 16  ;;  %v574_v32 = vsel %vm207_vm0, %v769_v29, 0  ;;  %v772_v41 = vld [vmem:[%s1024_s1 + $0x20] sm:$0xf] }
  0x17   : >> { %v201_v14 = vrot.slane %v199_v12, 1  ;;  %v404_v33 = vshrl.u32 %v763_v23, 16  ;;  %v564_v35 = vshrl.u32 %v770_v24, 16  ;;  %v513_v40 = vsel %vm207_vm0, %v767_v37, 0  ;;  %s775_s19 = sshll.u32 %s888_s24, 2  ;;  %s178_s24 = sadd.s32 1, %s888_s24  }
  0x18   : >> { %v408_v34 = vrot.slane %v406_v27, 1  ;;  %v568_v36 = vrot.slane %v566_v30, 1  ;;  %v624_v42 = vsel %vm207_vm0, %v772_v41, 0  ;;  %v619_v43 = vrot.slane %v770_v24, 1  ;;  %s677_s21 = scalar_lea.vmem %s928_s20, %s775_s19  ;;  %p175_p4 = scmp.ge.s32.totalorder %s178_s24, 8  }
  0x19   : >> { %v202_v20 = vor.u32 %v201_v14, %v197_v11  ;;  %vm678_vm3 = vcmask 60416  }
  0x1a   : >> { %v409_v38 = vor.u32 %v408_v34, %v404_v33  ;;  %v569_v39 = vor.u32 %v568_v36, %v564_v35 }
  0x1b   : >> { %801 = vmatmul.mubr.msk.bf16.vlgmr.msra.gmra.mxu0 %vm203_vm1, %v202_v20 }
  0x1c   : >> { %819 = vmatmul.mubr.msk.bf16.vlgmr.msra.gmra.mxu1 %vm203_vm1, %v184_v15  ;;  %811 = vmatpush3.bf16.msra.mxu0 %v304_v21 }
  0x1d   : >> { %812 = vmatprep.mubr.msk.bf16.mxu0 %vm891_vm2, %v890_v3  ;;  %822 = vmatprep.subr.bf16.mxu0 %v890_v3 }
  0x1e   : >> { %829 = vmatpush3.bf16.msra.mxu1 %v464_v22  ;;  %830 = vmatprep.mubr.msk.bf16.mxu1 %vm891_vm2, %v890_v3 }
  0x1f   : >> { %840 = vmatprep.subr.bf16.mxu1 %v890_v3 }
  0x23   : >> { %813 = vmatmul.mubr.msk.bf16.vlgmr.msra.gmra.mxu0 %vm203_vm1, %v299_v26 }
  0x24   : >> { %831 = vmatmul.mubr.msk.bf16.vlgmr.msra.gmra.mxu1 %vm203_vm1, %v459_v28  ;;  %823 = vmatpush3.bf16.msra.mxu0 %v414_v31 }
  0x25   : >> { %824 = vmatprep.mubr.msk.bf16.mxu0 %vm891_vm2, %v890_v3  ;;  %834 = vmatprep.subr.bf16.mxu0 %v890_v3 }
  0x26   : >> { %841 = vmatpush3.bf16.msra.mxu1 %v574_v32  ;;  %842 = vmatprep.mubr.msk.bf16.mxu1 %vm891_vm2, %v890_v3 }
  0x2b   : >> { %825 = vmatmul.mubr.msk.bf16.vlgmr.msra.gmra.mxu0 %vm203_vm1, %v409_v38 }
  0x2c   : >> { %843 = vmatmul.mubr.msk.bf16.vlgmr.msra.gmra.mxu1 %vm203_vm1, %v569_v39  ;;  %835 = vmatpush3.bf16.msra.mxu0 %v513_v40 }
  0x2d   : >> { %836 = vmatprep.mubr.msk.bf16.mxu0 %vm891_vm2, %v890_v3  ;;  %846 = vmatprep.subr.bf16.mxu0 %v890_v3 }
  0x33   : >> { %837 = vmatmul.mubr.msk.bf16.vlgmr.msra.gmra.mxu0 %vm203_vm1, %v186_v18 }
  0x34   : >> { %847 = vmatpush3.bf16.msra.mxu0 %v624_v42  ;;  %848 = vmatprep.mubr.msk.bf16.mxu0 %vm891_vm2, %v890_v3 }
  0x3b   : >> { %849 = vmatmul.mubr.msk.bf16.vlgmr.msra.gmra.mxu0 %vm203_vm1, %v619_v43 }
  0xd4   : >> { %v291_v44 = vpop.f32.mrf.mxu1 }
  0xd6   : >> { %v808_v45 = vpop.f32.mrf.mxu1 }
  0xd8   : >> { %v294_v46 = vpop.f32.mrf.mxu1 }
  0xda   : >> { %v809_v47 = vpop.f32.mrf.mxu1 }
  0xdb   : >> { %v245_v48 = vpop.f32.mrf.mxu0 }
  0xdc   : >> { %v389_v49 = vpop.f32.mrf.mxu1  ;;  %v292_v62 = vadd.f32 %v291_v44, %v245_v48 }
  0xdd   : >> { %v802_v50 = vpop.f32.mrf.mxu0 }
  0xde   : >> { %v820_v51 = vpop.f32.mrf.mxu1 }
  0xdf   : >> { %v248_v52 = vpop.f32.mrf.mxu0 }
  0xe0   : >> { %v392_v53 = vpop.f32.mrf.mxu1 }
  0xe1   : >> { %v803_v54 = vpop.f32.mrf.mxu0 }
  0xe2   : >> { %v821_v55 = vpop.f32.mrf.mxu1 }
  0xe3   : >> { %v340_v56 = vpop.f32.mrf.mxu0 }
  0xe4   : >> { %v500_v57 = vpop.f32.mrf.mxu1  ;;  %v346_v2 = vadd.f32 %v340_v56, %v292_v62 }
  0xe5   : >> { %v814_v58 = vpop.f32.mrf.mxu0 }
  0xe6   : >> { %v832_v59 = vpop.f32.mrf.mxu1  ;;  %v395_v7 = vadd.f32 %v389_v49, %v346_v2 }
  0xe7   : >> { %v343_v60 = vpop.f32.mrf.mxu0 }
  0xe8   : >> { %v503_v61 = vpop.f32.mrf.mxu1 }
  0xe9   : >> { %v815_v63 = vpop.f32.mrf.mxu0 }
  0xea   : >> { %v833_v1 = vpop.f32.mrf.mxu1 }
  0xeb   : >> { %v450_v3 = vpop.f32.mrf.mxu0 }
  0xec   : >> { %v610_v4 = vpop.f32.mrf.mxu1  ;;  %v456_v10 = vadd.f32 %v450_v3, %v395_v7 }
  0xed   : >> { %v826_v5 = vpop.f32.mrf.mxu0 }
  0xee   : >> { %v844_v6 = vpop.f32.mrf.mxu1  ;;  %v506_v14 = vadd.f32 %v500_v57, %v456_v10 }
  0xef   : >> { %v453_v8 = vpop.f32.mrf.mxu0 }
  0xf0   : >> { %v613_v9 = vpop.f32.mrf.mxu1 }
  0xf1   : >> { %v827_v11 = vpop.f32.mrf.mxu0 }
  0xf2   : >> { %v845_v12 = vpop.f32.mrf.mxu1 }
  0xf3   : >> { %v549_v13 = vpop.f32.mrf.mxu0 }
  0xf4   : >> { %v555_v16 = vadd.f32 %v549_v13, %v506_v14 }
  0xf5   : >> { %v838_v15 = vpop.f32.mrf.mxu0 }
  0xf6   : >> { %v616_v19 = vadd.f32 %v610_v4, %v555_v16 }
  0xf7   : >> { %v552_v17 = vpop.f32.mrf.mxu0 }
  0xf9   : >> { %v839_v18 = vpop.f32.mrf.mxu0 }
  0xfb   : >> { %v660_v20 = vpop.f32.mrf.mxu0 }
  0xfc   : >> { %v666_v21 = vadd.f32 %v660_v20, %v616_v19 }
  0xfd   : >> { %v850_v22 = vpop.f32.mrf.mxu0 }
  0xfe   : >> { %v673_v23 = vadd.f32 %v923_v0, %v666_v21 }
  0xff   : >> { %v663_v24 = vpop.f32.mrf.mxu0 }
 0x100   : >> { %v674_v25 = vmax.f32 %v673_v23, 0.0  ;;  %177 = sbr.rel (!%p175_p4) target bundleno = 15 (0xf), region = 79 }
 0x101   : >> { %v851_v26 = vpop.f32.mrf.mxu0 }
 0x102   : >> { %v675_v27 = vpack.c.bf16 %v674_v25, %v674_v25 }
 0x104   : >> { %679 = vst.msk [vmem:[%s677_s21] sm:$0xf] %vm678_vm3, %v675_v27 }
 0x105 PF: > { %s13_s12 = sadd.s32 1, %s884_s12  }
 0x106   : > { %p10_p5 = scmp.ge.s32.totalorder %s13_s12, 4  }
 0x108   :  { %12 = sbr.rel (!%p10_p5) target bundleno = 1 (0x1), region = 90 }

</bundles_post_ra>
